<compile_context>
chip_gen: v7x
topology: tpu7x:2x2x1
jax: 0.10.0
libtpu: 0.0.40
codegen_flags: <defaults>
</compile_context>

<pallas_src>
import numpy as np
import jax
import jax.numpy as jnp
from jax.experimental import pallas as pl
from jax.experimental.pallas import tpu as pltpu


def _round_up(x, m):
    return (x + m - 1) // m * m


_VMEM_INPUT_BUDGET = 8 * 2 ** 20   # double-buffered log_probs blocks (v7x-safe)
_MAX_BATCH_TILE = 128


# -----------------------------------------------------------------------------
# In-kernel helpers.  All scalars (vocab size, blank id) are Python ints so they
# become jaxpr literals — never closure-captured array constants.
# -----------------------------------------------------------------------------
def _argmax_lastdim(x, vocab):
    """First-occurrence argmax over the last (vocab/lane) axis of a 3D tile."""
    m = jnp.max(x, axis=-1, keepdims=True)                    # lane (XLU) reduce
    vidx = jax.lax.broadcasted_iota(jnp.int32, x.shape, 2)    # int32, no f32 temps
    return jnp.min(jnp.where(x >= m, vidx, vocab), axis=-1)   # (rows, T) int32


def _ctc_keep(p, len_col, blank_id):
    """keep[t] = (p[t]!=p[t-1] or p[t-1]==blank) and p[t]!=blank and t < len."""
    prev = pltpu.roll(p, shift=1, axis=1)                     # p[t-1] (wraps at t=0)
    t_idx = jax.lax.broadcasted_iota(jnp.int32, p.shape, 1)
    prev = jnp.where(t_idx == 0, blank_id, prev)              # define p[-1] := blank
    keep = ((p != prev) | (prev == blank_id)) & (p != blank_id) & (t_idx < len_col)
    return keep.astype(jnp.int32)


def _argmax_kernel(vocab):
    def kernel(lp_ref, pred_ref):
        pred_ref[...] = _argmax_lastdim(lp_ref[...], vocab)
    return kernel


def _argmax_keep_kernel(vocab, blank_id):
    def kernel(lp_ref, len_ref, pred_ref, keep_ref):
        p = _argmax_lastdim(lp_ref[...], vocab)
        pred_ref[...] = p
        keep_ref[...] = _ctc_keep(p, len_ref[...], blank_id)
    return kernel


def _keep_kernel(blank_id):
    def kernel(pred_ref, len_ref, keep_ref):
        keep_ref[...] = _ctc_keep(pred_ref[...], len_ref[...], blank_id)
    return kernel


# -----------------------------------------------------------------------------
# Wrapper-side tiling helpers
# -----------------------------------------------------------------------------
def _as_float(lp):
    lp = jnp.asarray(lp)
    if not jnp.issubdtype(lp.dtype, jnp.floating):
        lp = lp.astype(jnp.float32)
    return lp                         # bf16 stays bf16 (halves the HBM read)


def _lens_to_col(lens, B, T):
    if lens is None:
        return jnp.full((B, 1), T, dtype=jnp.int32)
    l = jnp.asarray(lens).astype(jnp.int32)
    if l.ndim == 1:
        l = l[:, None]
    return l.reshape(B, 1)


def _lp_row_bytes(tile_t, V, itemsize):
    # VMEM footprint of ONE batch row of a (tile_b, tile_t, V) block, double
    # buffered.  V maps to lanes and is padded to 128 *inside VMEM only*; the
    # HBM DMA moves just the logical bytes.
    return 2 * _round_up(tile_t, 8) * _round_up(V, 128) * itemsize


def _batch_tile(B, rows_cap):
    """Batch rows per block: == B for small batches (full-dim exemption, zero
    padding), else a multiple of 8 (pl.cdiv grid handles a ragged final block)."""
    rows_cap = max(1, int(rows_cap))
    if B <= min(rows_cap, 8):
        return B
    tile = max(8, (min(B, rows_cap, _MAX_BATCH_TILE) // 8) * 8)
    half = (_round_up(B, 8) // 2 // 8) * 8   # aim for >=2 programs (megacore/pipeline)
    if half >= 8:
        tile = min(tile, half)
    return tile


# -----------------------------------------------------------------------------
# Kernel 1: greedy argmax over the vocab axis  (log_probs.argmax(dim=-1))
# -----------------------------------------------------------------------------
def greedy_argmax(log_probs):
    """log_probs: (B, T, V) float -> (B, T) int32 greedy token ids (first max)."""
    lp = _as_float(log_probs)
    B, T, V = lp.shape
    itemsize = lp.dtype.itemsize

    # Short clips: full T per block (block dims == full dims, no (8,128) rule,
    # no padding).  Long clips: 256-wide lane-aligned T tiles so the grid has
    # enough programs for megacore sharding and DMA/compute overlap.
    tile_t = T if T < 256 else 256
    rows_cap = _VMEM_INPUT_BUDGET // max(1, _lp_row_bytes(tile_t, V, itemsize))
    tile_b = _batch_tile(B, rows_cap)
    grid = (pl.cdiv(B, tile_b), pl.cdiv(T, tile_t))

    return pl.pallas_call(
        _argmax_kernel(V),
        out_shape=jax.ShapeDtypeStruct((B, T), jnp.int32),
        grid=grid,
        in_specs=[pl.BlockSpec((tile_b, tile_t, V), lambda i, j: (i, j, 0))],
        out_specs=pl.BlockSpec((tile_b, tile_t), lambda i, j: (i, j)),
        compiler_params=pltpu.CompilerParams(
            dimension_semantics=("parallel", "parallel")),
        cost_estimate=pl.CostEstimate(
            flops=2 * B * T * V, transcendentals=0,
            bytes_accessed=B * T * V * itemsize + B * T * 4),
    )(lp)


# -----------------------------------------------------------------------------
# Fused kernel: argmax + CTC greedy-collapse keep mask in a single HBM pass
# -----------------------------------------------------------------------------
def greedy_argmax_and_keep(log_probs, predictions_len, blank_id):
    """Returns (preds (B,T) int32, keep (B,T) int32).  Length masking happens
    inside the kernel; the keep epilogue hides under the log_probs DMA."""
    lp = _as_float(log_probs)
    B, T, V = lp.shape
    itemsize = lp.dtype.itemsize
    blank_id = int(blank_id)

    row_bytes = _lp_row_bytes(T, V, itemsize)
    rows_cap = _VMEM_INPUT_BUDGET // max(1, row_bytes)
    if rows_cap < min(B, 8):
        # Time axis too long to keep resident next to the log_probs block:
        # fall back to T-tiled argmax + the standalone keep-mask kernel.
        preds = greedy_argmax(lp)
        return preds, compute_keep_mask(preds, predictions_len, blank_id)

    tile_b = _batch_tile(B, rows_cap)
    lens = _lens_to_col(predictions_len, B, T)
    grid = (pl.cdiv(B, tile_b),)

    preds, keep = pl.pallas_call(
        _argmax_keep_kernel(V, blank_id),
        out_shape=(jax.ShapeDtypeStruct((B, T), jnp.int32),
                   jax.ShapeDtypeStruct((B, T), jnp.int32)),
        grid=grid,
        in_specs=[pl.BlockSpec((tile_b, T, V), lambda i: (i, 0, 0)),
                  pl.BlockSpec((tile_b, 1), lambda i: (i, 0))],
        out_specs=(pl.BlockSpec((tile_b, T), lambda i: (i, 0)),
                   pl.BlockSpec((tile_b, T), lambda i: (i, 0))),
        compiler_params=pltpu.CompilerParams(dimension_semantics=("parallel",)),
        cost_estimate=pl.CostEstimate(
            flops=2 * B * T * V, transcendentals=0,
            bytes_accessed=B * T * V * itemsize + 2 * B * T * 4 + B * 4),
    )(lp, lens)
    return preds, keep


# -----------------------------------------------------------------------------
# Kernel 2 (standalone): CTC greedy-collapse keep mask on precomputed predictions
# -----------------------------------------------------------------------------
def compute_keep_mask(predictions, predictions_len, blank_id):
    """predictions: (B, T) ids -> int32 (B, T) mask, 1 where the token survives
    CTC greedy collapse.  Length masking is applied inside the kernel."""
    p = jnp.asarray(predictions).astype(jnp.int32)
    B, T = p.shape
    blank_id = int(blank_id)
    lens = _lens_to_col(predictions_len, B, T)

    # (tile_b, T) int32 in + out, double-buffered — tiny; cap at ~4 MiB.
    row_bytes = 4 * _round_up(T, 128) * 4
    tile_b = _batch_tile(B, (4 * 2 ** 20) // max(1, row_bytes))

    return pl.pallas_call(
        _keep_kernel(blank_id),
        out_shape=jax.ShapeDtypeStruct((B, T), jnp.int32),
        grid=(pl.cdiv(B, tile_b),),
        in_specs=[pl.BlockSpec((tile_b, T), lambda i: (i, 0)),
                  pl.BlockSpec((tile_b, 1), lambda i: (i, 0))],
        out_specs=pl.BlockSpec((tile_b, T), lambda i: (i, 0)),
        compiler_params=pltpu.CompilerParams(dimension_semantics=("parallel",)),
        cost_estimate=pl.CostEstimate(
            flops=6 * B * T, transcendentals=0,
            bytes_accessed=2 * B * T * 4 + B * 4),
    )(p, lens)


# -----------------------------------------------------------------------------
# Python wrappers mirroring the PyTorch modules
# -----------------------------------------------------------------------------
class GreedyDecoder:
    """JAX/Pallas port of the CTC greedy decoder used by QuartzNet.inference."""

    def __init__(self, labels_map, blank_id, batch_dim_index=0):
        self.labels_map = labels_map
        self.blank_id = int(blank_id)
        self.batch_dim_index = batch_dim_index

    def __call__(self, predictions, predictions_len=None, keep_mask=None):
        preds = jnp.asarray(predictions)
        if self.batch_dim_index != 0:
            preds = jnp.moveaxis(preds, self.batch_dim_index, 0)
        preds = preds.astype(jnp.int32)
        if keep_mask is None:
            keep_mask = compute_keep_mask(preds, predictions_len, self.blank_id)

        # Single coalesced device->host transfer, then vectorized numpy filtering;
        # the final labels_map join is host-side string processing.
        preds_np, mask_np = jax.device_get((preds, keep_mask))
        preds_np = np.asarray(preds_np)
        mask_np = np.asarray(mask_np)

        hypotheses = []
        for b in range(preds_np.shape[0]):
            toks = preds_np[b][mask_np[b] != 0]
            hypotheses.append(''.join(self.labels_map[int(c)] for c in toks
                                      if int(c) != self.blank_id))
        return hypotheses


class QuartzNet:
    """Pallas port of the numeric tail of the PyTorch QuartzNet module."""
    # TODO(synk): preprocessor / encoder / decoder are external NeMo sub-modules
    # (mel front-end + 1D-conv stacks) not defined in the spec; this port starts
    # from their output (`log_probs`) and implements argmax + CTC greedy decode.

    def __init__(self, decoder):
        self.ctc_decoder_predictions_tensor = decoder

    def forward(self, log_probs, encoded_len=None):
        greedy_predictions = greedy_argmax(log_probs)
        return log_probs, encoded_len, greedy_predictions

    def inference(self, log_probs, encoded_len):
        # Fused single pass over log_probs (argmax + CTC keep mask) — numerically
        # identical to forward() followed by the greedy decoder, but avoids a
        # second pallas_call and an HBM round trip of the predictions.
        blank_id = self.ctc_decoder_predictions_tensor.blank_id
        greedy_predictions, keep_mask = greedy_argmax_and_keep(
            log_probs, encoded_len, blank_id)
        return self.ctc_decoder_predictions_tensor(
            greedy_predictions, predictions_len=encoded_len, keep_mask=keep_mask)


def _reference_decode(predictions, predictions_len, labels_map, blank_id):
    """Pure-Python port of the original torch greedy decode (for verification)."""
    hypotheses = []
    for ind in range(predictions.shape[0]):
        prediction = list(predictions[ind])
        if predictions_len is not None:
            prediction = prediction[:int(predictions_len[ind])]
        decoded = []
        previous = blank_id
        for p in prediction:
            p = int(p)
            if (p != previous or previous == blank_id) and p != blank_id:
                decoded.append(p)
            previous = p
        hypotheses.append(''.join(labels_map[c] for c in decoded if c != blank_id))
    return hypotheses


if __name__ == "__main__":
    key = jax.random.PRNGKey(0)
    k1, k2, k3, k4 = jax.random.split(key, 4)

    # ------------------------------------------------------------------ test 1
    num_labels = 5                       # char ids 0..4, CTC blank = 5
    blank_id = num_labels
    labels_map = {i: chr(ord('a') + i) for i in range(num_labels)}

    B, T, V = 2, 16, num_labels + 1
    log_probs = jax.nn.log_softmax(
        jax.random.normal(k1, (B, T, V), dtype=jnp.float32), axis=-1)
    encoded_len = jax.random.randint(k2, (B,), T // 2, T + 1, dtype=jnp.int32)

    greedy = greedy_argmax(log_probs)
    jax.block_until_ready(greedy)
    ref_preds = jnp.argmax(log_probs, axis=-1).astype(jnp.int32)
    np.testing.assert_array_equal(np.asarray(greedy), np.asarray(ref_preds))

    fused_preds, fused_keep = greedy_argmax_and_keep(log_probs, encoded_len, blank_id)
    jax.block_until_ready((fused_preds, fused_keep))
    np.testing.assert_array_equal(np.asarray(fused_preds), np.asarray(ref_preds))

    mask = compute_keep_mask(greedy, encoded_len, blank_id)
    jax.block_until_ready(mask)
    np.testing.assert_array_equal(np.asarray(mask), np.asarray(fused_keep))

    decoder = GreedyDecoder(labels_map, blank_id)
    model = QuartzNet(decoder)
    hyps = model.inference(log_probs, encoded_len)
    ref = _reference_decode(np.asarray(ref_preds), np.asarray(encoded_len),
                            labels_map, blank_id)
    assert hyps == ref, f"mismatch: {hyps} vs {ref}"

    _, _, fwd_preds = model.forward(log_probs, encoded_len)
    np.testing.assert_array_equal(np.asarray(fwd_preds), np.asarray(ref_preds))

    # --------------------------------------------------- test 2 (QuartzNet-like V)
    B2, T2, V2 = 4, 200, 29
    blank_id2 = V2 - 1
    labels_map2 = {i: chr(ord('a') + i) for i in range(V2 - 1)}
    lp2 = jax.nn.log_softmax(
        jax.random.normal(k3, (B2, T2, V2), dtype=jnp.float32), axis=-1)
    len2 = jax.random.randint(k4, (B2,), 1, T2 + 1, dtype=jnp.int32)

    g2 = greedy_argmax(lp2)
    ref2 = jnp.argmax(lp2, axis=-1).astype(jnp.int32)
    np.testing.assert_array_equal(np.asarray(g2), np.asarray(ref2))

    p2, keep2 = greedy_argmax_and_keep(lp2, len2, blank_id2)
    jax.block_until_ready((p2, keep2))
    np.testing.assert_array_equal(np.asarray(p2), np.asarray(ref2))
    mask2 = compute_keep_mask(g2, len2, blank_id2)
    np.testing.assert_array_equal(np.asarray(mask2), np.asarray(keep2))

    model2 = QuartzNet(GreedyDecoder(labels_map2, blank_id2))
    hyps2 = model2.inference(lp2, len2)
    ref_h2 = _reference_decode(np.asarray(ref2), np.asarray(len2),
                               labels_map2, blank_id2)
    assert hyps2 == ref_h2, f"mismatch: {hyps2} vs {ref_h2}"

    print("KERNEL_OK")
</pallas_src>

<mosaic_0001>
module attributes {stable_mosaic.version = 11 : i64} {
  func.func @kernel(%arg0: i32, %arg1: i32, %arg2: memref<2x16x6xf32, #tpu.memory_space<vmem>>, %arg3: memref<2x16xi32, #tpu.memory_space<vmem>>) attributes {dimension_semantics = [#tpu.dimension_semantics<parallel>, #tpu.dimension_semantics<parallel>], iteration_bounds = array<i64: 1, 1>, scalar_prefetch = 0 : i64, scratch_operands = 0 : i64, tpu.core_type = #tpu.core_type<tc>, window_params = [{transform_indices = @transform_0, window_bounds = array<i64: 2, 16, 6>}, {transform_indices = @transform_1, window_bounds = array<i64: 2, 16>}]} {
    %c0 = arith.constant 0 : index
    %c0_0 = arith.constant 0 : index
    %c0_1 = arith.constant 0 : index
    %0 = vector.load %arg2[%c0, %c0_0, %c0_1] : memref<2x16x6xf32, #tpu.memory_space<vmem>>, vector<2x16x6xf32>
    %cst = arith.constant dense<0xFF800000> : vector<2x16xf32>
    %1 = vector.multi_reduction <maximumf>, %0, %cst [2] : vector<2x16x6xf32> to vector<2x16xf32>
    %2 = vector.shape_cast %1 : vector<2x16xf32> to vector<2x16x1xf32>
    %3 = tpu.iota {dimensions = array<i32: 2>} : vector<2x16x6xi32>
    %4 = vector.broadcast %2 : vector<2x16x1xf32> to vector<2x16x6xf32>
    %5 = arith.cmpf oge, %0, %4 : vector<2x16x6xf32>
    %c6_i32 = arith.constant 6 : i32
    %6 = vector.broadcast %c6_i32 : i32 to vector<2x16x6xi32>
    %7 = arith.select %5, %3, %6 : vector<2x16x6xi1>, vector<2x16x6xi32>
    %cst_2 = arith.constant dense<2147483647> : vector<2x16xi32>
    %8 = vector.multi_reduction <minsi>, %7, %cst_2 [2] : vector<2x16x6xi32> to vector<2x16xi32>
    %c0_3 = arith.constant 0 : index
    %c0_4 = arith.constant 0 : index
    %9 = vector.load %arg3[%c0_3, %c0_4] : memref<2x16xi32, #tpu.memory_space<vmem>>, vector<2x16xi32>
    tpu.vector_store %arg3[%c0_3, %c0_4], %8 {strides = array<i32>} : memref<2x16xi32, #tpu.memory_space<vmem>>, vector<2x16xi32>,
    return
  }
  func.func @transform_0(%arg0: i32, %arg1: i32) -> (i32, i32, i32) {
    %c0_i32 = arith.constant 0 : i32
    %c0_i32_0 = arith.constant 0 : i32
    return %arg0, %arg1, %c0_i32 : i32, i32, i32
  }
  func.func @transform_1(%arg0: i32, %arg1: i32) -> (i32, i32) {
    %c0_i32 = arith.constant 0 : i32
    return %arg0, %arg1 : i32, i32
  }
}

</mosaic_0001>

<bundles_post_ra>
// kernel: tpu_custom_call.1
= control target key start
LH: loop header
LB: loop body
LE: loop exit
PB: predicated region body
PF: predicated region fallthrough
CT: control target
= control target key end

     0   :  { %vm13_vm0 = vcmask 48128   ;;  %s210_s0 = inlined_call_operand.vmem [shape: f32[2,16,6], index: 0, kind: input, shape index: {}]   ;;  %s211_s1 = inlined_call_operand.hbm [shape: s32[2,16], index: 1, kind: output, shape index: {}]  }
   0x1   :  { %v9_v0 = vld [vmem:[%s210_s0] sm:$0xff]  ;;  %v11_v1 = vld [vmem:[%s210_s0 + $0x10] sm:$0xff]  ;;  %v10_v2 = vld [vmem:[%s210_s0 + $0x8] sm:$0xff] }
   0x2   :  { %v14_v3 = vsel %vm13_vm0, %v9_v0, -inf  ;;  %v20_v4 = vsel %vm13_vm0, %v11_v1, -inf  ;;  %v12_v5 = vld [vmem:[%s210_s0 + $0x18] sm:$0xff] }
   0x3   :  { %6 = vsyncpa [#allocation3], 0  ;;  %15 = vmax.xlane.f32.xlu0 %v14_v3  ;;  %21 = vmax.xlane.f32.xlu1 %v20_v4  ;;  %v17_v6 = vsel %vm13_vm0, %v10_v2, -inf  ;;  %v23_v7 = vsel %vm13_vm0, %v12_v5, -inf  ;;  %v26_v8 = vlaneseq  ;;  %vm105_vm9 = vcmask 130112   ;;  %s159_s0 = smov [#allocation2]  }
   0x4   :  { %s126_s14 = sshll.u32 %s159_s0, 4  ;;  %vm116_vm10 = vcmask 1041409   ;;  %vm118_vm11 = vcmask 123904   ;;  %s127_s14 = int_to_ptr.vmem [resolvable:$true] %s126_s14 }
   0x5   :  { %v186_v9 = vand.u32 127, %v26_v8  ;;  %v97_v48 = vshrl.u32 %v26_v8, 7  ;;  %s135_s15 = scalar_lea.vmem %s127_s14, 32  ;;  %p140_p1 = scmp.lt.s32.totalorder %s127_s14, %s127_s14 }
   0x6   :  { %p136_p0 = scmp.ne.s32.totalorder %s127_s14, %s135_s15  ;;  %p141_p2 = scmp.lt.s32.totalorder %s135_s15, %s135_s15 }
   0x7   :  { %18 = vmax.xlane.f32.xlu0 %v17_v6  ;;  %24 = vmax.xlane.f32.xlu1 %v23_v7  ;;  %v100_v51 = vadd.s32 4294967288, %v186_v9  ;;  %v98_v56 = vsub.s32 %v186_v9, %v97_v48 }
   0x8   :  { %p142_p3 = por %p141_p2, %p140_p1 }
   0x9   :  { %v103_v60 = vsub.s32 %v100_v51, %v97_v48 }
   0xa   :  { %p143_p4 = pnand %p142_p3, %p136_p0 }
  0x90   :  { %v16_v10 = vpop.xlane.xlu0 %15  ;;  %v22_v11 = vpop.xlane.xlu1 %21 }
  0x91   :  { %vm28_vm1 = vcmp.ge.f32.partialorder %v9_v0, %v16_v10  ;;  %vm30_vm2 = vcmp.ge.f32.partialorder %v11_v1, %v22_v11 }
  0x92   :  { %v32_v12 = vsel %vm28_vm1, %v186_v9, 6  ;;  %v34_v13 = vsel %vm30_vm2, %v186_v9, 6 }
  0x93   :  { %v36_v14 = vsel %vm13_vm0, %v32_v12, 2147483647  ;;  %v66_v15 = vsel %vm13_vm0, %v34_v13, 2147483647 }
  0x94   :  { %v19_v16 = vpop.xlane.xlu0 %18  ;;  %v25_v17 = vpop.xlane.xlu1 %24  ;;  %v38_v18 = vshra.s32 %v36_v14, 16  ;;  %v68_v19 = vshra.s32 %v66_v15, 16  ;;  %v37_v30 = vand.u32 65535, %v36_v14  ;;  %v67_v34 = vand.u32 65535, %v66_v15 }
  0x95   :  { %vm29_vm3 = vcmp.ge.f32.partialorder %v10_v2, %v19_v16  ;;  %vm31_vm4 = vcmp.ge.f32.partialorder %v12_v5, %v25_v17 }
  0x96   :  { %v33_v20 = vsel %vm29_vm3, %v186_v9, 6  ;;  %v35_v21 = vsel %vm31_vm4, %v186_v9, 6  ;;  %v40_v22 = vcvt.s32.f32 %v38_v18  ;;  %v70_v25 = vcvt.s32.f32 %v68_v19 }
  0x97   :  { %v51_v23 = vsel %vm13_vm0, %v33_v20, 2147483647  ;;  %v81_v24 = vsel %vm13_vm0, %v35_v21, 2147483647  ;;  %v39_v32 = vcvt.s32.f32 %v37_v30  ;;  %v69_v39 = vcvt.s32.f32 %v67_v34 }
  0x98   :  { %41 = vmin.xlane.f32.xlu0 %v40_v22  ;;  %v53_v26 = vshra.s32 %v51_v23, 16  ;;  %v83_v27 = vshra.s32 %v81_v24, 16  ;;  %v52_v33 = vand.u32 65535, %v51_v23  ;;  %v82_v40 = vand.u32 65535, %v81_v24 }
  0x9a   :  { %v55_v28 = vcvt.s32.f32 %v53_v26  ;;  %v85_v29 = vcvt.s32.f32 %v83_v27  ;;  %v54_v38 = vcvt.s32.f32 %v52_v33  ;;  %v84_v44 = vcvt.s32.f32 %v82_v40 }
  0x9c   :  { %71 = vmin.xlane.f32.xlu0 %v70_v25  ;;  %56 = vmin.xlane.f32.xlu1 %v55_v28 }
  0xa0   :  { %86 = vmin.xlane.f32.xlu1 %v85_v29 }
 0x125   :  { %v42_v31 = vpop.xlane.xlu0 %41 }
 0x126   :  { %vm43_vm5 = vcmp.eq.f32.partialorder %v40_v22, %v42_v31  ;;  %v48_v46 = vcvt.f32.s32 %v42_v31 }
 0x127   :  { %v44_v35 = vsel %vm43_vm5, %v39_v32, inf }
 0x128   :  { %45 = vmin.xlane.f32.xlu0 %v44_v35  ;;  %v49_v52 = vshll.u32 %v48_v46, 16 }
 0x129   :  { %v57_v36 = vpop.xlane.xlu1 %56  ;;  %v72_v37 = vpop.xlane.xlu0 %71 }
 0x12a   :  { %vm58_vm6 = vcmp.eq.f32.partialorder %v55_v28, %v57_v36  ;;  %vm73_vm7 = vcmp.eq.f32.partialorder %v70_v25, %v72_v37  ;;  %v63_v47 = vcvt.f32.s32 %v57_v36  ;;  %v78_v53 = vcvt.f32.s32 %v72_v37 }
 0x12b   :  { %v59_v41 = vsel %vm58_vm6, %v54_v38, inf  ;;  %v74_v42 = vsel %vm73_vm7, %v69_v39, inf }
 0x12c   :  { %60 = vmin.xlane.f32.xlu1 %v59_v41  ;;  %75 = vmin.xlane.f32.xlu0 %v74_v42  ;;  %v64_v54 = vshll.u32 %v63_v47, 16  ;;  %v79_v63 = vshll.u32 %v78_v53, 16 }
 0x12d   :  { %v87_v43 = vpop.xlane.xlu1 %86 }
 0x12e   :  { %vm88_vm8 = vcmp.eq.f32.partialorder %v85_v29, %v87_v43  ;;  %v93_v55 = vcvt.f32.s32 %v87_v43 }
 0x12f   :  { %v89_v45 = vsel %vm88_vm8, %v84_v44, inf }
 0x130   :  { %90 = vmin.xlane.f32.xlu1 %v89_v45  ;;  %v94_v1 = vshll.u32 %v93_v55, 16 }
 0x1b5   :  { %v46_v49 = vpop.xlane.xlu0 %45 }
 0x1b6   :  { %v47_v50 = vcvt.f32.s32 %v46_v49 }
 0x1b8   :  { %v50_v59 = vadd.s32 %v49_v52, %v47_v50 }
 0x1b9   :  { %v61_v57 = vpop.xlane.xlu1 %60  ;;  %v76_v58 = vpop.xlane.xlu0 %75 }
 0x1ba   :  { %v62_v61 = vcvt.f32.s32 %v61_v57  ;;  %v77_v62 = vcvt.f32.s32 %v76_v58  ;;  %v99_v3 = vrot.slane %v50_v59, %v98_v56 }
 0x1bc   :  { %v65_v0 = vadd.s32 %v64_v54, %v62_v61  ;;  %v80_v5 = vadd.s32 %v79_v63, %v77_v62 }
 0x1bd   :  { %v91_v2 = vpop.xlane.xlu1 %90 }
 0x1be   :  { %v104_v4 = vrot.slane %v65_v0, %v103_v60  ;;  %v92_v6 = vcvt.f32.s32 %v91_v2  ;;  %v110_v9 = vrot.slane %v80_v5, %v98_v56 }
 0x1c0   :  { %v95_v7 = vadd.s32 %v94_v1, %v92_v6  ;;  %v106_v8 = vsel %vm105_vm9, %v104_v4, %v99_v3 }
 0x1c2   :  { %v114_v10 = vrot.slane %v95_v7, %v103_v60 }
 0x1c4   :  { %v115_v11 = vsel %vm105_vm9, %v114_v10, %v110_v9 }
 0x1c5   :  { %v117_v12 = vsel %vm116_vm10, %v115_v11, %v106_v8 }
 0x1c6   :  { %119 = vst.msk [vmem:[#allocation2] sm:$0x3] %vm118_vm11, %v117_v12 }
 0x1c7   :  { %146 = shalt.err (!%p143_p4)
}
 0x1c8   :  { %s147_s18 = scalar_lea.hbm %s211_s1, 32 }
 0x1c9   :  { %p148_p5 = scmp.ne.s32.totalorder %s211_s1, %s147_s18  ;;  %p151_p6 = scmp.lt.u32.totalorder %s147_s18, %s211_s1 }
 0x1cb   :  { %p153_p7 = pnand %p151_p6, %p148_p5 }
 0x1cd   :  { %156 = shalt.err (!%p153_p7)
}
 0x1ce   :  { %129 = dma.vmem_to_hbm [thread:$0]  %s127_s14, 32, %s211_s1, [#allocation3]  }
 0x1cf   :  { %157 = dma.done.wait [#allocation3], 32  }
 0x1d0   :  { %158 = vsyncadd [#allocation3], 4294967264 }
 0x1d1   :  { %133 = vsyncpa [#allocation3], 1 }

</bundles_post_ra>
